<compile_context>
chip_gen: v6e
topology: v6e:2x2x1
jax: 0.10.0
libtpu: 0.0.40
codegen_flags: <defaults>
</compile_context>

<pallas_src>
import jax
import jax.numpy as jnp
from jax.experimental import pallas as pl
from jax.experimental.pallas import tpu as pltpu

IN_SIZE = 6
FC1_SIZE = 4
FC2_SIZE = 1
MAX_SPEED = 0.5

LANE = 128         # samples per sublane-row (lane width)
CHUNK = 32         # sublane-rows per inner compute step (32*128 = 4096 samples)
MAX_TILE_S = 1024  # sublane-rows of batch per grid step (1024*128 samples, 3 MiB in)


def _round_up(n, m):
    return ((n + m - 1) // m) * m


def _cdiv(a, b):
    return (a + b - 1) // b


def two_ball_kernel(w1_ref, b1_ref, w2_ref, b2_ref, x_ref, o_ref):
    """Batch-on-lanes forward.

    x_ref : (6, tile_s, LANE) f32 VMEM — row k is feature k of tile_s*128 samples.
    o_ref : (tile_s, LANE)    f32 VMEM — one scalar output per sample (lane dense).
    w1/b1/w2/b2 : flat f32 scalar tables in SMEM.
    """
    # Hoist all scalar weight reads out of the chunk loop (SMEM sld once).
    w1 = [[w1_ref[k * FC1_SIZE + j] for j in range(FC1_SIZE)]
          for k in range(IN_SIZE)]
    b1 = [b1_ref[j] for j in range(FC1_SIZE)]
    w2 = [w2_ref[j] for j in range(FC1_SIZE)]
    b2 = b2_ref[0]

    tile_s = o_ref.shape[0]
    n_chunks = tile_s // CHUNK        # wrapper guarantees tile_s % CHUNK == 0

    def chunk_body(c, carry):
        off = pl.multiple_of(c * CHUNK, CHUNK)
        # fc1: one (CHUNK, LANE) accumulator per hidden unit; each feature row
        # of the chunk is loaded once and broadcast-FMA'd with scalar weights
        # on the VPU (24 mul + 18 add). ~25-30 live vregs total.
        acc = [None] * FC1_SIZE
        for k in range(IN_SIZE):
            xk = x_ref[k, pl.ds(off, CHUNK), :]
            for j in range(FC1_SIZE):
                t = xk * w1[k][j]
                acc[j] = t if acc[j] is None else acc[j] + t
        # tanh (EUP) + fc2 (4 more broadcast FMAs) + final tanh & scale.
        y = None
        for j in range(FC1_SIZE):
            h = jnp.tanh(acc[j] + b1[j])
            t = h * w2[j]
            y = t if y is None else y + t
        o_ref[pl.ds(off, CHUNK), :] = MAX_SPEED * jnp.tanh(y + b2)
        return carry

    jax.lax.fori_loop(0, n_chunks, chunk_body, 0)


def two_ball_forward_packed(xr, batch, w1, b1, w2, b2, *, tile_s):
    """Kernel entry for pre-packed input.

    xr    : [6, S, 128] f32, feature-major batch-on-lanes layout (S*128 >= batch,
            padded samples are arbitrary — they are sliced away).
    batch : number of valid samples.
    tile_s: sublane-rows of batch per grid step; multiple of CHUNK, divides S.
    """
    F, S, L = xr.shape
    assert F == IN_SIZE and L == LANE, (xr.shape,)
    assert tile_s % CHUNK == 0 and S % tile_s == 0, (S, tile_s)
    grid = (S // tile_s,)
    Bp = S * LANE

    xr = xr.astype(jnp.float32)
    # Flat scalar tables for SMEM.
    w1f = w1.astype(jnp.float32).reshape(IN_SIZE * FC1_SIZE)
    b1f = b1.astype(jnp.float32).reshape(FC1_SIZE)
    w2f = w2.astype(jnp.float32).reshape(FC1_SIZE * FC2_SIZE)
    b2f = b2.astype(jnp.float32).reshape(FC2_SIZE)

    cost = pl.CostEstimate(
        flops=int(Bp) * (2 * IN_SIZE * FC1_SIZE + FC1_SIZE + 2 * FC1_SIZE + 2),
        transcendentals=int(Bp) * (FC1_SIZE + FC2_SIZE),
        bytes_accessed=int(4 * (xr.size + Bp + w1f.size + b1f.size
                                + w2f.size + b2f.size)),
    )

    smem_spec = pl.BlockSpec(memory_space=pltpu.MemorySpace.SMEM)

    out = pl.pallas_call(
        two_ball_kernel,
        out_shape=jax.ShapeDtypeStruct((S, LANE), jnp.float32),
        grid=grid,
        in_specs=[
            smem_spec,  # w1 (24,)
            smem_spec,  # b1 (4,)
            smem_spec,  # w2 (4,)
            smem_spec,  # b2 (1,)
            pl.BlockSpec((IN_SIZE, tile_s, LANE), lambda i: (0, i, 0)),  # x tile
        ],
        out_specs=pl.BlockSpec((tile_s, LANE), lambda i: (i, 0)),
        compiler_params=pltpu.CompilerParams(
            dimension_semantics=("parallel",)),   # megacore sharding on v7x
        cost_estimate=cost,
    )(w1f, b1f, w2f, b2f, xr)

    return out.reshape(Bp)[:batch].reshape(batch, FC2_SIZE)


def two_ball_forward(x, w1, b1, w2, b2, *, max_tile_s=MAX_TILE_S):
    """x: [B, 6].  w1: [6,4], b1: [4], w2: [4,1], b2: [1] (weights stored [in,out]).

    Repacks x into the [6, S, 128] layout (single fused XLA pad+transpose pass)
    and calls the Pallas kernel. Producers that can emit the packed layout
    directly should call two_ball_forward_packed and skip this staging pass.
    """
    B = x.shape[0]
    s_total = _cdiv(max(B, 1), LANE)                  # sublane-rows of batch needed
    max_tile_s = max(CHUNK, _round_up(max_tile_s, CHUNK))
    tile_s = min(max_tile_s, _round_up(s_total, CHUNK))
    S = _round_up(max(s_total, 1), tile_s)            # total sublane-rows
    Bp = S * LANE

    xf = x.astype(jnp.float32)
    if B == Bp:
        xp = xf
    else:
        xp = jnp.zeros((Bp, IN_SIZE), jnp.float32).at[:B, :].set(xf)
    # [Bp, 6] -> [6, S, 128]  (features, batch-rows, batch-lanes)
    xr = xp.reshape(S, LANE, IN_SIZE).transpose(2, 0, 1)

    return two_ball_forward_packed(xr, B, w1, b1, w2, b2, tile_s=tile_s)


def init_params(key):
    """Deterministic init mimicking nn.Linear's U(-1/sqrt(fan_in), 1/sqrt(fan_in))."""
    k1, k2, k3, k4 = jax.random.split(key, 4)
    bound1 = 1.0 / jnp.sqrt(IN_SIZE)
    bound2 = 1.0 / jnp.sqrt(FC1_SIZE)
    # Stored as [in, out] (transpose of PyTorch's [out, in]).
    w1 = jax.random.uniform(k1, (IN_SIZE, FC1_SIZE), jnp.float32, -bound1, bound1)
    b1 = jax.random.uniform(k2, (FC1_SIZE,), jnp.float32, -bound1, bound1)
    w2 = jax.random.uniform(k3, (FC1_SIZE, FC2_SIZE), jnp.float32, -bound2, bound2)
    b2 = jax.random.uniform(k4, (FC2_SIZE,), jnp.float32, -bound2, bound2)
    return w1, b1, w2, b2


def reference_forward(x, w1, b1, w2, b2):
    h = jnp.tanh(x @ w1 + b1)
    y = jnp.tanh(h @ w2 + b2)
    return MAX_SPEED * y


if __name__ == "__main__":
    # TODO(synk): MSELoss / Adam in the module are training-side and not part of forward.
    key = jax.random.PRNGKey(0)
    kx, kp = jax.random.split(key)
    w1, b1, w2, b2 = init_params(kp)

    # Small single-tile, single-chunk case.
    B = 8
    x = jax.random.normal(kx, (B, IN_SIZE), jnp.float32)
    out = jax.block_until_ready(two_ball_forward(x, w1, b1, w2, b2))
    ref = reference_forward(x, w1, b1, w2, b2)
    assert out.shape == (B, FC2_SIZE), out.shape
    assert jnp.allclose(out, ref, atol=1e-5, rtol=1e-5), (out, ref)

    # Larger batch: exercises the multi-chunk inner fori_loop (single grid step).
    B2 = 10000
    x2 = jax.random.normal(kx, (B2, IN_SIZE), jnp.float32)
    ref2 = reference_forward(x2, w1, b1, w2, b2)
    out2 = jax.block_until_ready(two_ball_forward(x2, w1, b1, w2, b2))
    assert out2.shape == (B2, FC2_SIZE), out2.shape
    assert jnp.allclose(out2, ref2, atol=1e-5, rtol=1e-5)

    # Same batch with a small tile: exercises the multi-step pipelined grid.
    out3 = jax.block_until_ready(
        two_ball_forward(x2, w1, b1, w2, b2, max_tile_s=CHUNK))
    assert out3.shape == (B2, FC2_SIZE), out3.shape
    assert jnp.allclose(out3, ref2, atol=1e-5, rtol=1e-5)

    print("KERNEL_OK")
</pallas_src>

<mosaic_0001>
module attributes {stable_mosaic.version = 11 : i64} {
  func.func @two_ball_kernel(%arg0: i32, %arg1: memref<24xf32, #tpu.memory_space<smem>>, %arg2: memref<4xf32, #tpu.memory_space<smem>>, %arg3: memref<4xf32, #tpu.memory_space<smem>>, %arg4: memref<1xf32, #tpu.memory_space<smem>>, %arg5: memref<6x32x128xf32, #tpu.memory_space<vmem>>, %arg6: memref<32x128xf32, #tpu.memory_space<vmem>>) attributes {dimension_semantics = [#tpu.dimension_semantics<parallel>], iteration_bounds = array<i64: 1>, scalar_prefetch = 0 : i64, scratch_operands = 0 : i64, tpu.core_type = #tpu.core_type<tc>, window_params = [{transform_indices = @transform_0, window_bounds = array<i64: 24>}, {transform_indices = @transform_1, window_bounds = array<i64: 4>}, {transform_indices = @transform_2, window_bounds = array<i64: 4>}, {transform_indices = @transform_3, window_bounds = array<i64: 1>}, {transform_indices = @transform_4, window_bounds = array<i64: 6, 32, 128>}, {transform_indices = @transform_5, window_bounds = array<i64: 32, 128>}]} {
    %c0 = arith.constant 0 : index
    %0 = memref.load %arg1[%c0] : memref<24xf32, #tpu.memory_space<smem>>
    %c1 = arith.constant 1 : index
    %1 = memref.load %arg1[%c1] : memref<24xf32, #tpu.memory_space<smem>>
    %c2 = arith.constant 2 : index
    %2 = memref.load %arg1[%c2] : memref<24xf32, #tpu.memory_space<smem>>
    %c3 = arith.constant 3 : index
    %3 = memref.load %arg1[%c3] : memref<24xf32, #tpu.memory_space<smem>>
    %c4 = arith.constant 4 : index
    %4 = memref.load %arg1[%c4] : memref<24xf32, #tpu.memory_space<smem>>
    %c5 = arith.constant 5 : index
    %5 = memref.load %arg1[%c5] : memref<24xf32, #tpu.memory_space<smem>>
    %c6 = arith.constant 6 : index
    %6 = memref.load %arg1[%c6] : memref<24xf32, #tpu.memory_space<smem>>
    %c7 = arith.constant 7 : index
    %7 = memref.load %arg1[%c7] : memref<24xf32, #tpu.memory_space<smem>>
    %c8 = arith.constant 8 : index
    %8 = memref.load %arg1[%c8] : memref<24xf32, #tpu.memory_space<smem>>
    %c9 = arith.constant 9 : index
    %9 = memref.load %arg1[%c9] : memref<24xf32, #tpu.memory_space<smem>>
    %c10 = arith.constant 10 : index
    %10 = memref.load %arg1[%c10] : memref<24xf32, #tpu.memory_space<smem>>
    %c11 = arith.constant 11 : index
    %11 = memref.load %arg1[%c11] : memref<24xf32, #tpu.memory_space<smem>>
    %c12 = arith.constant 12 : index
    %12 = memref.load %arg1[%c12] : memref<24xf32, #tpu.memory_space<smem>>
    %c13 = arith.constant 13 : index
    %13 = memref.load %arg1[%c13] : memref<24xf32, #tpu.memory_space<smem>>
    %c14 = arith.constant 14 : index
    %14 = memref.load %arg1[%c14] : memref<24xf32, #tpu.memory_space<smem>>
    %c15 = arith.constant 15 : index
    %15 = memref.load %arg1[%c15] : memref<24xf32, #tpu.memory_space<smem>>
    %c16 = arith.constant 16 : index
    %16 = memref.load %arg1[%c16] : memref<24xf32, #tpu.memory_space<smem>>
    %c17 = arith.constant 17 : index
    %17 = memref.load %arg1[%c17] : memref<24xf32, #tpu.memory_space<smem>>
    %c18 = arith.constant 18 : index
    %18 = memref.load %arg1[%c18] : memref<24xf32, #tpu.memory_space<smem>>
    %c19 = arith.constant 19 : index
    %19 = memref.load %arg1[%c19] : memref<24xf32, #tpu.memory_space<smem>>
    %c20 = arith.constant 20 : index
    %20 = memref.load %arg1[%c20] : memref<24xf32, #tpu.memory_space<smem>>
    %c21 = arith.constant 21 : index
    %21 = memref.load %arg1[%c21] : memref<24xf32, #tpu.memory_space<smem>>
    %c22 = arith.constant 22 : index
    %22 = memref.load %arg1[%c22] : memref<24xf32, #tpu.memory_space<smem>>
    %c23 = arith.constant 23 : index
    %23 = memref.load %arg1[%c23] : memref<24xf32, #tpu.memory_space<smem>>
    %c0_0 = arith.constant 0 : index
    %24 = memref.load %arg2[%c0_0] : memref<4xf32, #tpu.memory_space<smem>>
    %c1_1 = arith.constant 1 : index
    %25 = memref.load %arg2[%c1_1] : memref<4xf32, #tpu.memory_space<smem>>
    %c2_2 = arith.constant 2 : index
    %26 = memref.load %arg2[%c2_2] : memref<4xf32, #tpu.memory_space<smem>>
    %c3_3 = arith.constant 3 : index
    %27 = memref.load %arg2[%c3_3] : memref<4xf32, #tpu.memory_space<smem>>
    %c0_4 = arith.constant 0 : index
    %28 = memref.load %arg3[%c0_4] : memref<4xf32, #tpu.memory_space<smem>>
    %c1_5 = arith.constant 1 : index
    %29 = memref.load %arg3[%c1_5] : memref<4xf32, #tpu.memory_space<smem>>
    %c2_6 = arith.constant 2 : index
    %30 = memref.load %arg3[%c2_6] : memref<4xf32, #tpu.memory_space<smem>>
    %c3_7 = arith.constant 3 : index
    %31 = memref.load %arg3[%c3_7] : memref<4xf32, #tpu.memory_space<smem>>
    %c0_8 = arith.constant 0 : index
    %32 = memref.load %arg4[%c0_8] : memref<1xf32, #tpu.memory_space<smem>>
    %c0_i32 = arith.constant 0 : i32
    %c32_i32 = arith.constant 32 : i32
    %33 = arith.muli %c0_i32, %c32_i32 : i32
    %34 = tpu.assume_multiple %33, 32 : i32
    %c0_9 = arith.constant 0 : index
    %35 = arith.index_cast %34 : i32 to index
    %c0_10 = arith.constant 0 : index
    %36 = vector.load %arg5[%c0_9, %35, %c0_10] : memref<6x32x128xf32, #tpu.memory_space<vmem>>, vector<1x32x128xf32>
    %37 = vector.shape_cast %36 : vector<1x32x128xf32> to vector<32x128xf32>
    %38 = vector.broadcast %0 : f32 to vector<32x128xf32>
    %39 = arith.mulf %37, %38 : vector<32x128xf32>
    %40 = vector.broadcast %1 : f32 to vector<32x128xf32>
    %41 = arith.mulf %37, %40 : vector<32x128xf32>
    %42 = vector.broadcast %2 : f32 to vector<32x128xf32>
    %43 = arith.mulf %37, %42 : vector<32x128xf32>
    %44 = vector.broadcast %3 : f32 to vector<32x128xf32>
    %45 = arith.mulf %37, %44 : vector<32x128xf32>
    %c1_11 = arith.constant 1 : index
    %46 = arith.index_cast %34 : i32 to index
    %c0_12 = arith.constant 0 : index
    %47 = vector.load %arg5[%c1_11, %46, %c0_12] : memref<6x32x128xf32, #tpu.memory_space<vmem>>, vector<1x32x128xf32>
    %48 = vector.shape_cast %47 : vector<1x32x128xf32> to vector<32x128xf32>
    %49 = vector.broadcast %4 : f32 to vector<32x128xf32>
    %50 = arith.mulf %48, %49 : vector<32x128xf32>
    %51 = arith.addf %39, %50 : vector<32x128xf32>
    %52 = vector.broadcast %5 : f32 to vector<32x128xf32>
    %53 = arith.mulf %48, %52 : vector<32x128xf32>
    %54 = arith.addf %41, %53 : vector<32x128xf32>
    %55 = vector.broadcast %6 : f32 to vector<32x128xf32>
    %56 = arith.mulf %48, %55 : vector<32x128xf32>
    %57 = arith.addf %43, %56 : vector<32x128xf32>
    %58 = vector.broadcast %7 : f32 to vector<32x128xf32>
    %59 = arith.mulf %48, %58 : vector<32x128xf32>
    %60 = arith.addf %45, %59 : vector<32x128xf32>
    %c2_13 = arith.constant 2 : index
    %61 = arith.index_cast %34 : i32 to index
    %c0_14 = arith.constant 0 : index
    %62 = vector.load %arg5[%c2_13, %61, %c0_14] : memref<6x32x128xf32, #tpu.memory_space<vmem>>, vector<1x32x128xf32>
    %63 = vector.shape_cast %62 : vector<1x32x128xf32> to vector<32x128xf32>
    %64 = vector.broadcast %8 : f32 to vector<32x128xf32>
    %65 = arith.mulf %63, %64 : vector<32x128xf32>
    %66 = arith.addf %51, %65 : vector<32x128xf32>
    %67 = vector.broadcast %9 : f32 to vector<32x128xf32>
    %68 = arith.mulf %63, %67 : vector<32x128xf32>
    %69 = arith.addf %54, %68 : vector<32x128xf32>
    %70 = vector.broadcast %10 : f32 to vector<32x128xf32>
    %71 = arith.mulf %63, %70 : vector<32x128xf32>
    %72 = arith.addf %57, %71 : vector<32x128xf32>
    %73 = vector.broadcast %11 : f32 to vector<32x128xf32>
    %74 = arith.mulf %63, %73 : vector<32x128xf32>
    %75 = arith.addf %60, %74 : vector<32x128xf32>
    %c3_15 = arith.constant 3 : index
    %76 = arith.index_cast %34 : i32 to index
    %c0_16 = arith.constant 0 : index
    %77 = vector.load %arg5[%c3_15, %76, %c0_16] : memref<6x32x128xf32, #tpu.memory_space<vmem>>, vector<1x32x128xf32>
    %78 = vector.shape_cast %77 : vector<1x32x128xf32> to vector<32x128xf32>
    %79 = vector.broadcast %12 : f32 to vector<32x128xf32>
    %80 = arith.mulf %78, %79 : vector<32x128xf32>
    %81 = arith.addf %66, %80 : vector<32x128xf32>
    %82 = vector.broadcast %13 : f32 to vector<32x128xf32>
    %83 = arith.mulf %78, %82 : vector<32x128xf32>
    %84 = arith.addf %69, %83 : vector<32x128xf32>
    %85 = vector.broadcast %14 : f32 to vector<32x128xf32>
    %86 = arith.mulf %78, %85 : vector<32x128xf32>
    %87 = arith.addf %72, %86 : vector<32x128xf32>
    %88 = vector.broadcast %15 : f32 to vector<32x128xf32>
    %89 = arith.mulf %78, %88 : vector<32x128xf32>
    %90 = arith.addf %75, %89 : vector<32x128xf32>
    %c4_17 = arith.constant 4 : index
    %91 = arith.index_cast %34 : i32 to index
    %c0_18 = arith.constant 0 : index
    %92 = vector.load %arg5[%c4_17, %91, %c0_18] : memref<6x32x128xf32, #tpu.memory_space<vmem>>, vector<1x32x128xf32>
    %93 = vector.shape_cast %92 : vector<1x32x128xf32> to vector<32x128xf32>
    %94 = vector.broadcast %16 : f32 to vector<32x128xf32>
    %95 = arith.mulf %93, %94 : vector<32x128xf32>
    %96 = arith.addf %81, %95 : vector<32x128xf32>
    %97 = vector.broadcast %17 : f32 to vector<32x128xf32>
    %98 = arith.mulf %93, %97 : vector<32x128xf32>
    %99 = arith.addf %84, %98 : vector<32x128xf32>
    %100 = vector.broadcast %18 : f32 to vector<32x128xf32>
    %101 = arith.mulf %93, %100 : vector<32x128xf32>
    %102 = arith.addf %87, %101 : vector<32x128xf32>
    %103 = vector.broadcast %19 : f32 to vector<32x128xf32>
    %104 = arith.mulf %93, %103 : vector<32x128xf32>
    %105 = arith.addf %90, %104 : vector<32x128xf32>
    %c5_19 = arith.constant 5 : index
    %106 = arith.index_cast %34 : i32 to index
    %c0_20 = arith.constant 0 : index
    %107 = vector.load %arg5[%c5_19, %106, %c0_20] : memref<6x32x128xf32, #tpu.memory_space<vmem>>, vector<1x32x128xf32>
    %108 = vector.shape_cast %107 : vector<1x32x128xf32> to vector<32x128xf32>
    %109 = vector.broadcast %20 : f32 to vector<32x128xf32>
    %110 = arith.mulf %108, %109 : vector<32x128xf32>
    %111 = arith.addf %96, %110 : vector<32x128xf32>
    %112 = vector.broadcast %21 : f32 to vector<32x128xf32>
    %113 = arith.mulf %108, %112 : vector<32x128xf32>
    %114 = arith.addf %99, %113 : vector<32x128xf32>
    %115 = vector.broadcast %22 : f32 to vector<32x128xf32>
    %116 = arith.mulf %108, %115 : vector<32x128xf32>
    %117 = arith.addf %102, %116 : vector<32x128xf32>
    %118 = vector.broadcast %23 : f32 to vector<32x128xf32>
    %119 = arith.mulf %108, %118 : vector<32x128xf32>
    %120 = arith.addf %105, %119 : vector<32x128xf32>
    %121 = vector.broadcast %24 : f32 to vector<32x128xf32>
    %122 = arith.addf %111, %121 : vector<32x128xf32>
    %123 = math.tanh %122 : vector<32x128xf32>
    %124 = vector.broadcast %28 : f32 to vector<32x128xf32>
    %125 = arith.mulf %123, %124 : vector<32x128xf32>
    %126 = vector.broadcast %25 : f32 to vector<32x128xf32>
    %127 = arith.addf %114, %126 : vector<32x128xf32>
    %128 = math.tanh %127 : vector<32x128xf32>
    %129 = vector.broadcast %29 : f32 to vector<32x128xf32>
    %130 = arith.mulf %128, %129 : vector<32x128xf32>
    %131 = arith.addf %125, %130 : vector<32x128xf32>
    %132 = vector.broadcast %26 : f32 to vector<32x128xf32>
    %133 = arith.addf %117, %132 : vector<32x128xf32>
    %134 = math.tanh %133 : vector<32x128xf32>
    %135 = vector.broadcast %30 : f32 to vector<32x128xf32>
    %136 = arith.mulf %134, %135 : vector<32x128xf32>
    %137 = arith.addf %131, %136 : vector<32x128xf32>
    %138 = vector.broadcast %27 : f32 to vector<32x128xf32>
    %139 = arith.addf %120, %138 : vector<32x128xf32>
    %140 = math.tanh %139 : vector<32x128xf32>
    %141 = vector.broadcast %31 : f32 to vector<32x128xf32>
    %142 = arith.mulf %140, %141 : vector<32x128xf32>
    %143 = arith.addf %137, %142 : vector<32x128xf32>
    %144 = vector.broadcast %32 : f32 to vector<32x128xf32>
    %145 = arith.addf %143, %144 : vector<32x128xf32>
    %146 = math.tanh %145 : vector<32x128xf32>
    %cst = arith.constant 5.000000e-01 : f32
    %147 = vector.broadcast %cst : f32 to vector<32x128xf32>
    %148 = arith.mulf %147, %146 : vector<32x128xf32>
    %149 = arith.index_cast %34 : i32 to index
    %c0_21 = arith.constant 0 : index
    %150 = vector.load %arg6[%149, %c0_21] : memref<32x128xf32, #tpu.memory_space<vmem>>, vector<32x128xf32>
    tpu.vector_store %arg6[%149, %c0_21], %148 {strides = array<i32>} : memref<32x128xf32, #tpu.memory_space<vmem>>, vector<32x128xf32>,
    %c1_i32 = arith.constant 1 : i32
    return
  }
  func.func @transform_0(%arg0: i32) -> i32 {
    %c0_i32 = arith.constant 0 : i32
    %c0_i32_0 = arith.constant 0 : i32
    return %c0_i32 : i32
  }
  func.func @transform_1(%arg0: i32) -> i32 {
    %c0_i32 = arith.constant 0 : i32
    %c0_i32_0 = arith.constant 0 : i32
    return %c0_i32 : i32
  }
  func.func @transform_2(%arg0: i32) -> i32 {
    %c0_i32 = arith.constant 0 : i32
    %c0_i32_0 = arith.constant 0 : i32
    return %c0_i32 : i32
  }
  func.func @transform_3(%arg0: i32) -> i32 {
    %c0_i32 = arith.constant 0 : i32
    %c0_i32_0 = arith.constant 0 : i32
    return %c0_i32 : i32
  }
  func.func @transform_4(%arg0: i32) -> (i32, i32, i32) {
    %c0_i32 = arith.constant 0 : i32
    %c0_i32_0 = arith.constant 0 : i32
    %c0_i32_1 = arith.constant 0 : i32
    return %c0_i32, %arg0, %c0_i32_0 : i32, i32, i32
  }
  func.func @transform_5(%arg0: i32) -> (i32, i32) {
    %c0_i32 = arith.constant 0 : i32
    %c0_i32_0 = arith.constant 0 : i32
    return %arg0, %c0_i32 : i32, i32
  }
}

</mosaic_0001>

<bundles_post_ra>
// kernel: tpu_custom_call.1
= control target key start
LH: loop header
LB: loop body
LE: loop exit
PB: predicated region body
PF: predicated region fallthrough
CT: control target
= control target key end

     0   :  { %11 = vsyncpa [#allocation6], 0  ;;  %s741_s0 = inlined_call_operand.vmem [shape: f32[24], index: 0, kind: input, shape index: {}]   ;;  %s742_s1 = inlined_call_operand.vmem [shape: f32[4], index: 1, kind: input, shape index: {}]   ;;  %s743_s2 = inlined_call_operand.vmem [shape: f32[4], index: 2, kind: input, shape index: {}]   ;;  %s744_s3 = inlined_call_operand.<no memory space> [shape: f32[1], index: 3, kind: input, shape index: {}]   ;;  %s745_s4 = inlined_call_operand.hbm [shape: f32[6,32,128], index: 4, kind: input, shape index: {}]   ;;  %s746_s5 = inlined_call_operand.hbm [shape: f32[32,128], index: 5, kind: output, shape index: {}]  }
   0x1   :  { %12 = vsyncpa [#allocation8], 0 }
   0x2   :  { %13 = vsyncpa [#allocation4], 0  ;;  %s31_s20 = sshll.u32 %s742_s1, 4  ;;  %s32_s20 = int_to_ptr.vmem [resolvable:$true] %s31_s20 }
   0x3   :  { %14 = vsyncpa [#allocation5], 0  ;;  %s21_s23 = sshll.u32 %s741_s0, 4  ;;  %s524_s24 = scalar_lea.vmem %s32_s20, 16  ;;  %s22_s23 = int_to_ptr.vmem [resolvable:$true] %s21_s23 }
   0x4   :  { %p525_p0 = scmp.ne.s32.totalorder %s32_s20, %s524_s24  ;;  %p529_p1 = scmp.lt.s32.totalorder %s32_s20, %s32_s20 }
   0x5   :  { %p530_p2 = scmp.lt.s32.totalorder %s524_s24, %s524_s24 }
   0x7   :  { %p531_p3 = por %p530_p2, %p529_p1 }
   0x9   :  { %p532_p4 = pnand %p531_p3, %p525_p0 }
   0xb   :  { %535 = shalt.err (!%p532_p4)
}
   0xc   :  { %s608_s25 = smov [#allocation7]   ;;  %s536_s26 = scalar_lea.vmem %s22_s23, 16 }
   0xd   :  { %34 = dma.vmem_to_smem %s32_s20, 16, %s608_s25, [#allocation8]  }
   0xe   :  { %p537_p5 = scmp.ne.s32.totalorder %s22_s23, %s536_s26  ;;  %p541_p6 = scmp.lt.s32.totalorder %s22_s23, %s22_s23 }
   0xf   :  { %p542_p7 = scmp.lt.s32.totalorder %s536_s26, %s536_s26 }
  0x11   :  { %p543_p8 = por %p542_p7, %p541_p6 }
  0x13   :  { %p544_p9 = pnand %p543_p8, %p537_p5 }
  0x15   :  { %547 = shalt.err (!%p544_p9)
}
  0x16   :  { %s609_s1 = smov [#allocation3]   ;;  %s41_s28 = sshll.u32 %s743_s2, 4  ;;  %s42_s28 = int_to_ptr.vmem [resolvable:$true] %s41_s28 }
  0x17   :  { %24 = dma.vmem_to_smem %s22_s23, 16, %s609_s1, [#allocation6]  }
  0x18   :  { %s548_s29 = scalar_lea.vmem %s42_s28, 16  ;;  %p553_p11 = scmp.lt.s32.totalorder %s42_s28, %s42_s28 }
  0x19   :  { %p549_p10 = scmp.ne.s32.totalorder %s42_s28, %s548_s29  ;;  %p554_p12 = scmp.lt.s32.totalorder %s548_s29, %s548_s29 }
  0x1b   :  { %p555_p13 = por %p554_p12, %p553_p11 }
  0x1d   :  { %p556_p0 = pnand %p555_p13, %p549_p10 }
  0x1f   :  { %559 = shalt.err (!%p556_p0)
}
  0x20   :  { %s610_s30 = smov [#allocation9]   ;;  %s611_s6 = smov [#allocation10]  }
  0x21   :  { %44 = dma.vmem_to_smem %s42_s28, 16, %s610_s30, [#allocation8]  }
  0x22   :  { %s52_s7 = sshll.u32 %s611_s6, 4  ;;  %s53_s7 = int_to_ptr.vmem [resolvable:$true] %s52_s7 }
  0x23   :  { %s568_s8 = scalar_lea.vmem %s53_s7, 3072  ;;  %p573_p2 = scmp.lt.s32.totalorder %s53_s7, %s53_s7 }
  0x24   :  { %p569_p1 = scmp.ne.s32.totalorder %s53_s7, %s568_s8  ;;  %p574_p3 = scmp.lt.s32.totalorder %s568_s8, %s568_s8 }
  0x26   :  { %p575_p4 = por %p574_p3, %p573_p2 }
  0x28   :  { %p576_p5 = pnand %p575_p4, %p569_p1 }
  0x2a   :  { %579 = shalt.err (!%p576_p5)
}
  0x2b   :  { %s612_s2 = smov 128   ;;  %s613_s9 = smov 8  }
  0x2c   :  { %58 = dma.hbm_to_vmem [thread:$0]  %s745_s4, 3072, %s53_s7, [#allocation4], %s612_s2, %s612_s2, %s613_s9  }
  0x2d   :  { %600 = dma.done.wait [#allocation6], 16  }
  0x2e   :  { %601 = vsyncadd [#allocation6], 4294967280 }
  0x2f   :  { %602 = dma.done.wait [#allocation8], 32  }
  0x30   :  { %603 = vsyncadd [#allocation8], 4294967264 }
  0x31   :  { %604 = dma.done.wait [#allocation4], 3072  }
  0x32   :  { %605 = vsyncadd [#allocation4], 4294964224 }
  0x33   :  { %71 = sfence }
  0x34   :  { %s72_s12 = sld [smem:[#allocation3]]  ;;  %v105_v0 = vld [vmem:[#allocation10] sm:$0xff]  ;;  %v106_v1 = vld [vmem:[#allocation10 + $0x8] sm:$0xff]  ;;  %v107_v2 = vld [vmem:[#allocation10 + $0x10] sm:$0xff] }
  0x35   :  { %s448_s13 = sld [smem:[#allocation3 + $0x1]]  ;;  %v108_v4 = vld [vmem:[#allocation10 + $0x18] sm:$0xff]  ;;  %v131_v10 = vld [vmem:[#allocation10 + $0x20] sm:$0xff]  ;;  %v132_v11 = vld [vmem:[#allocation10 + $0x28] sm:$0xff] }
  0x36   :  { %s449_s14 = sld [smem:[#allocation3 + $0x2]]  ;;  %v133_v17 = vld [vmem:[#allocation10 + $0x30] sm:$0xff]  ;;  %v134_v18 = vld [vmem:[#allocation10 + $0x38] sm:$0xff]  ;;  %v173_v50 = vld [vmem:[#allocation10 + $0x40] sm:$0xff] }
  0x37   :  { %s451_s15 = sld [smem:[#allocation3 + $0x4]]  ;;  %v174_v51 = vld [vmem:[#allocation10 + $0x48] sm:$0xff]  ;;  %v175_v57 = vld [vmem:[#allocation10 + $0x50] sm:$0xff]  ;;  %v176_v58 = vld [vmem:[#allocation10 + $0x58] sm:$0xff] }
  0x38   :  { %s450_s16 = sld [smem:[#allocation3 + $0x3]] }
  0x39   :  { %s452_s17 = sld [smem:[#allocation3 + $0x5]] }
  0x3a   :  { %s660_s18 = sld [smem:[#allocation3 + $0x6]]  ;;  %v109_v3 = vstv %s72_s12 }
  0x3b   :  { %s662_s4 = sld [smem:[#allocation3 + $0x7]]  ;;  %v114_v5 = vstv %s448_s13  ;;  %v110_v7 = vmul.f32 %v109_v3, %v105_v0  ;;  %v111_v8 = vmul.f32 %v109_v3, %v106_v1  ;;  %v112_v9 = vmul.f32 %v109_v3, %v107_v2 }
  0x3c   :  { %v119_v6 = vstv %s449_s14  ;;  %s664_s19 = sld [smem:[#allocation3 + $0x8]]  ;;  %v113_v13 = vmul.f32 %v109_v3, %v108_v4  ;;  %v115_v14 = vmul.f32 %v114_v5, %v105_v0  ;;  %v116_v15 = vmul.f32 %v114_v5, %v106_v1 }
  0x3d   :  { %v135_v12 = vstv %s451_s15  ;;  %v117_v19 = vmul.f32 %v114_v5, %v107_v2  ;;  %v118_v20 = vmul.f32 %v114_v5, %v108_v4  ;;  %v120_v21 = vmul.f32 %v119_v6, %v105_v0  ;;  %s666_s20 = sld [smem:[#allocation3 + $0x9]] }
  0x3e   :  { %v124_v16 = vstv %s450_s16  ;;  %v121_v23 = vmul.f32 %v119_v6, %v106_v1  ;;  %v122_v24 = vmul.f32 %v119_v6, %v107_v2  ;;  %v136_v25 = vmul.f32 %v135_v12, %v131_v10  ;;  %s669_s21 = sld [smem:[#allocation3 + $0xa]] }
  0x3f   :  { %v144_v22 = vstv %s452_s17  ;;  %v137_v26 = vmul.f32 %v135_v12, %v132_v11  ;;  %v123_v27 = vmul.f32 %v119_v6, %v108_v4  ;;  %v125_v28 = vmul.f32 %v124_v16, %v105_v0  ;;  %s672_s22 = sld [smem:[#allocation3 + $0xb]] }
  0x40   :  { %v138_v29 = vmul.f32 %v135_v12, %v133_v17  ;;  %v139_v30 = vmul.f32 %v135_v12, %v134_v18  ;;  %v126_v31 = vmul.f32 %v124_v16, %v106_v1  ;;  %v127_v32 = vmul.f32 %v124_v16, %v107_v2  ;;  %s675_s23 = sld [smem:[#allocation3 + $0xc]] }
  0x41   :  { %v145_v33 = vmul.f32 %v144_v22, %v131_v10  ;;  %v153_v34 = vstv %s660_s18  ;;  %v146_v35 = vmul.f32 %v144_v22, %v132_v11  ;;  %v147_v36 = vmul.f32 %v144_v22, %v133_v17  ;;  %s677_s24 = sld [smem:[#allocation3 + $0xd]] }
  0x42   :  { %v148_v37 = vmul.f32 %v144_v22, %v134_v18  ;;  %v162_v38 = vstv %s662_s4  ;;  %v128_v39 = vmul.f32 %v124_v16, %v108_v4  ;;  %v140_v40 = vadd.f32 %v136_v25, %v110_v7  ;;  %s681_s25 = sld [smem:[#allocation3 + $0xe]]  ;;  %s614_s4 = smov [#allocation11]  }
  0x43   :  { %v141_v41 = vadd.f32 %v137_v26, %v111_v8  ;;  %v154_v42 = vmul.f32 %v153_v34, %v131_v10  ;;  %v142_v43 = vadd.f32 %v138_v29, %v112_v9  ;;  %v143_v44 = vadd.f32 %v139_v30, %v113_v13  ;;  %s684_s26 = sld [smem:[#allocation3 + $0xf]]  ;;  %v215_v26 = vld [vmem:[#allocation10 + $0x60] sm:$0xff] }
  0x44   :  { %v155_v45 = vmul.f32 %v153_v34, %v132_v11  ;;  %v156_v46 = vmul.f32 %v153_v34, %v133_v17  ;;  %v149_v47 = vadd.f32 %v145_v33, %v115_v14  ;;  %v157_v48 = vmul.f32 %v153_v34, %v134_v18  ;;  %s687_s1 = sld [smem:[#allocation3 + $0x10]]  ;;  %v218_v33 = vld [vmem:[#allocation10 + $0x78] sm:$0xff] }
  0x45   :  { %v163_v49 = vmul.f32 %v162_v38, %v131_v10  ;;  %v177_v52 = vstv %s664_s19  ;;  %v150_v53 = vadd.f32 %v146_v35, %v116_v15  ;;  %v151_v54 = vadd.f32 %v147_v36, %v117_v19  ;;  %s690_s0 = sld [smem:[#allocation3 + $0x11]] }
  0x46   :  { %v152_v55 = vadd.f32 %v148_v37, %v118_v20  ;;  %v164_v56 = vmul.f32 %v162_v38, %v132_v11  ;;  %v158_v59 = vadd.f32 %v154_v42, %v120_v21  ;;  %v165_v60 = vmul.f32 %v162_v38, %v133_v17  ;;  %s693_s27 = sld [smem:[#allocation3 + $0x12]] }
  0x47   :  { %v166_v61 = vmul.f32 %v162_v38, %v134_v18  ;;  %v186_v62 = vstv %s666_s20  ;;  %v159_v63 = vadd.f32 %v155_v45, %v121_v23  ;;  %v160_v0 = vadd.f32 %v156_v46, %v122_v24  ;;  %s696_s28 = sld [smem:[#allocation3 + $0x13]] }
  0x48   :  { %v178_v1 = vmul.f32 %v177_v52, %v173_v50  ;;  %v179_v2 = vmul.f32 %v177_v52, %v174_v51  ;;  %v161_v3 = vadd.f32 %v157_v48, %v123_v27  ;;  %v167_v4 = vadd.f32 %v163_v49, %v125_v28  ;;  %v216_v27 = vld [vmem:[#allocation10 + $0x68] sm:$0xff]  ;;  %s698_s29 = sld [smem:[#allocation3 + $0x14]] }
  0x49   :  { %v180_v5 = vmul.f32 %v177_v52, %v175_v57  ;;  %v181_v6 = vmul.f32 %v177_v52, %v176_v58  ;;  %v168_v7 = vadd.f32 %v164_v56, %v126_v31  ;;  %v187_v8 = vmul.f32 %v186_v62, %v173_v50  ;;  %s702_s30 = sld [smem:[#allocation3 + $0x15]] }
  0x4a   :  { %v188_v9 = vmul.f32 %v186_v62, %v174_v51  ;;  %v195_v10 = vstv %s669_s21  ;;  %v169_v11 = vadd.f32 %v165_v60, %v127_v32  ;;  %v170_v12 = vadd.f32 %v166_v61, %v128_v39  ;;  %v217_v32 = vld [vmem:[#allocation10 + $0x70] sm:$0xff]  ;;  %s705_s6 = sld [smem:[#allocation3 + $0x16]] }
  0x4b   :  { %v189_v13 = vmul.f32 %v186_v62, %v175_v57  ;;  %v190_v14 = vmul.f32 %v186_v62, %v176_v58  ;;  %v182_v15 = vadd.f32 %v178_v1, %v140_v40  ;;  %v183_v16 = vadd.f32 %v179_v2, %v141_v41  ;;  %v257_v2 = vld [vmem:[#allocation10 + $0x80] sm:$0xff]  ;;  %s708_s7 = sld [smem:[#allocation7]] }
  0x4c   :  { %v196_v17 = vmul.f32 %v195_v10, %v173_v50  ;;  %v204_v18 = vstv %s672_s22  ;;  %v184_v19 = vadd.f32 %v180_v5, %v142_v43  ;;  %v185_v20 = vadd.f32 %v181_v6, %v143_v44  ;;  %s713_s8 = sld [smem:[#allocation3 + $0x17]] }
  0x4d   :  { %v197_v21 = vmul.f32 %v195_v10, %v174_v51  ;;  %v198_v22 = vmul.f32 %v195_v10, %v175_v57  ;;  %v191_v23 = vadd.f32 %v187_v8, %v149_v47  ;;  %v192_v24 = vadd.f32 %v188_v9, %v150_v53  ;;  %v260_v9 = vld [vmem:[#allocation10 + $0x98] sm:$0xff]  ;;  %s717_s10 = sld [smem:[#allocation7 + $0x1]] }
  0x4e   :  { %v199_v25 = vmul.f32 %v195_v10, %v176_v58  ;;  %v219_v28 = vstv %s675_s23  ;;  %v193_v29 = vadd.f32 %v189_v13, %v151_v54  ;;  %v205_v30 = vmul.f32 %v204_v18, %v173_v50  ;;  %s719_s11 = sld [smem:[#allocation7 + $0x2]] }
  0x4f   :  { %v206_v31 = vmul.f32 %v204_v18, %v174_v51  ;;  %v228_v34 = vstv %s677_s24  ;;  %v194_v35 = vadd.f32 %v190_v14, %v152_v55  ;;  %v200_v36 = vadd.f32 %v196_v17, %v158_v59  ;;  %s725_s12 = sld [smem:[#allocation7 + $0x3]] }
  0x50   :  { %v207_v37 = vmul.f32 %v204_v18, %v175_v57  ;;  %v208_v38 = vmul.f32 %v204_v18, %v176_v58  ;;  %v201_v39 = vadd.f32 %v197_v21, %v159_v63  ;;  %v202_v40 = vadd.f32 %v198_v22, %v160_v0  ;;  %s100_s13 = sld [smem:[#allocation9]] }
  0x51   :  { %v220_v41 = vmul.f32 %v219_v28, %v215_v26  ;;  %v221_v42 = vmul.f32 %v219_v28, %v216_v27  ;;  %v203_v43 = vadd.f32 %v199_v25, %v161_v3  ;;  %v222_v44 = vmul.f32 %v219_v28, %v217_v32  ;;  %v258_v3 = vld [vmem:[#allocation10 + $0x88] sm:$0xff]  ;;  %s474_s14 = sld [smem:[#allocation9 + $0x1]] }
  0x52   :  { %v223_v45 = vmul.f32 %v219_v28, %v218_v33  ;;  %v229_v46 = vmul.f32 %v228_v34, %v215_v26  ;;  %v209_v47 = vadd.f32 %v205_v30, %v167_v4  ;;  %v210_v48 = vadd.f32 %v206_v31, %v168_v7  ;;  %v259_v4 = vld [vmem:[#allocation10 + $0x90] sm:$0xff]  ;;  %s475_s15 = sld [smem:[#allocation9 + $0x2]] }
  0x53   :  { %v230_v49 = vmul.f32 %v228_v34, %v216_v27  ;;  %v237_v50 = vstv %s681_s25  ;;  %v211_v51 = vadd.f32 %v207_v37, %v169_v11  ;;  %v212_v52 = vadd.f32 %v208_v38, %v170_v12  ;;  %v299_v38 = vld [vmem:[#allocation10 + $0xa0] sm:$0xff]  ;;  %s476_s16 = sld [smem:[#allocation9 + $0x3]] }
  0x54   :  { %v231_v53 = vmul.f32 %v228_v34, %v217_v32  ;;  %v232_v54 = vmul.f32 %v228_v34, %v218_v33  ;;  %v224_v55 = vadd.f32 %v220_v41, %v182_v15  ;;  %v225_v56 = vadd.f32 %v221_v42, %v183_v16 }
  0x55   :  { %v238_v57 = vmul.f32 %v237_v50, %v215_v26  ;;  %v246_v58 = vstv %s684_s26  ;;  %v226_v59 = vadd.f32 %v222_v44, %v184_v19  ;;  %v227_v60 = vadd.f32 %v223_v45, %v185_v20 }
  0x56   :  { %v233_v61 = vadd.f32 %v229_v46, %v191_v23  ;;  %v239_v62 = vmul.f32 %v237_v50, %v216_v27  ;;  %v234_v63 = vadd.f32 %v230_v49, %v192_v24  ;;  %v240_v0 = vmul.f32 %v237_v50, %v217_v32  ;;  %v302_v46 = vld [vmem:[#allocation10 + $0xb8] sm:$0xff] }
  0x57   :  { %v241_v1 = vmul.f32 %v237_v50, %v218_v33  ;;  %v261_v5 = vstv %s687_s1  ;;  %v235_v6 = vadd.f32 %v231_v53, %v193_v29  ;;  %v247_v7 = vmul.f32 %v246_v58, %v215_v26 }
  0x58   :  { %v248_v8 = vmul.f32 %v246_v58, %v216_v27  ;;  %v270_v10 = vstv %s690_s0  ;;  %v236_v11 = vadd.f32 %v232_v54, %v194_v35  ;;  %v242_v12 = vadd.f32 %v238_v57, %v200_v36 }
  0x59   :  { %v249_v13 = vmul.f32 %v246_v58, %v217_v32  ;;  %v250_v14 = vmul.f32 %v246_v58, %v218_v33  ;;  %v243_v15 = vadd.f32 %v239_v62, %v201_v39  ;;  %v262_v16 = vmul.f32 %v261_v5, %v257_v2  ;;  %v300_v39 = vld [vmem:[#allocation10 + $0xa8] sm:$0xff] }
  0x5a   :  { %v263_v17 = vmul.f32 %v261_v5, %v258_v3  ;;  %v264_v18 = vmul.f32 %v261_v5, %v259_v4  ;;  %v244_v19 = vadd.f32 %v240_v0, %v202_v40  ;;  %v245_v20 = vadd.f32 %v241_v1, %v203_v43  ;;  %v710_v40 = vld [vmem:[#allocation10 + $0xb0] sm:$0xff] }
  0x5b   :  { %v265_v21 = vmul.f32 %v261_v5, %v260_v9  ;;  %v271_v22 = vmul.f32 %v270_v10, %v257_v2  ;;  %v251_v23 = vadd.f32 %v247_v7, %v209_v47  ;;  %v252_v24 = vadd.f32 %v248_v8, %v210_v48 }
  0x5c   :  { %v272_v25 = vmul.f32 %v270_v10, %v258_v3  ;;  %v279_v26 = vstv %s693_s27  ;;  %v253_v27 = vadd.f32 %v249_v13, %v211_v51  ;;  %v254_v28 = vadd.f32 %v250_v14, %v212_v52 }
  0x5d   :  { %v273_v29 = vmul.f32 %v270_v10, %v259_v4  ;;  %v274_v30 = vmul.f32 %v270_v10, %v260_v9  ;;  %v266_v31 = vadd.f32 %v262_v16, %v224_v55  ;;  %v267_v32 = vadd.f32 %v263_v17, %v225_v56 }
  0x5e   :  { %v268_v33 = vadd.f32 %v264_v18, %v226_v59  ;;  %v288_v34 = vstv %s696_s28  ;;  %v269_v35 = vadd.f32 %v265_v21, %v227_v60  ;;  %v275_v36 = vadd.f32 %v271_v22, %v233_v61 }
  0x5f   :  { %v280_v37 = vmul.f32 %v279_v26, %v257_v2  ;;  %v303_v41 = vstv %s698_s29  ;;  %v276_v42 = vadd.f32 %v272_v25, %v234_v63  ;;  %v281_v43 = vmul.f32 %v279_v26, %v258_v3 }
  0x60   :  { %v282_v44 = vmul.f32 %v279_v26, %v259_v4  ;;  %v283_v45 = vmul.f32 %v279_v26, %v260_v9  ;;  %v277_v47 = vadd.f32 %v273_v29, %v235_v6  ;;  %v278_v48 = vadd.f32 %v274_v30, %v236_v11 }
  0x61   :  { %v289_v49 = vmul.f32 %v288_v34, %v257_v2  ;;  %v312_v50 = vstv %s702_s30  ;;  %v290_v51 = vmul.f32 %v288_v34, %v258_v3  ;;  %v304_v52 = vmul.f32 %v303_v41, %v299_v38 }
  0x62   :  { %v305_v53 = vmul.f32 %v303_v41, %v300_v39  ;;  %v306_v54 = vmul.f32 %v303_v41, %v710_v40  ;;  %v284_v55 = vadd.f32 %v280_v37, %v242_v12  ;;  %v291_v56 = vmul.f32 %v288_v34, %v259_v4 }
  0x63   :  { %v292_v57 = vmul.f32 %v288_v34, %v260_v9  ;;  %v307_v58 = vmul.f32 %v303_v41, %v302_v46  ;;  %v285_v59 = vadd.f32 %v281_v43, %v243_v15  ;;  %v286_v60 = vadd.f32 %v282_v44, %v244_v19 }
  0x64   :  { %v287_v61 = vadd.f32 %v283_v45, %v245_v20  ;;  %v313_v62 = vmul.f32 %v312_v50, %v299_v38  ;;  %v314_v63 = vmul.f32 %v312_v50, %v300_v39  ;;  %v315_v0 = vmul.f32 %v312_v50, %v710_v40 }
  0x65   :  { %v316_v1 = vmul.f32 %v312_v50, %v302_v46  ;;  %v321_v2 = vstv %s705_s6  ;;  %v293_v3 = vadd.f32 %v289_v49, %v251_v23  ;;  %v308_v5 = vadd.f32 %v304_v52, %v266_v31 }
  0x66   :  { %v309_v6 = vadd.f32 %v305_v53, %v267_v32  ;;  %v310_v7 = vadd.f32 %v306_v54, %v268_v33  ;;  %v294_v4 = vadd.f32 %v290_v51, %v252_v24  ;;  %v295_v8 = vadd.f32 %v291_v56, %v253_v27 }
  0x67   :  { %v311_v9 = vadd.f32 %v307_v58, %v269_v35  ;;  %v339_v10 = vstv %s708_s7  ;;  %v296_v11 = vadd.f32 %v292_v57, %v254_v28  ;;  %v317_v12 = vadd.f32 %v313_v62, %v275_v36 }
  0x68   :  { %v322_v13 = vmul.f32 %v321_v2, %v299_v38  ;;  %v330_v14 = vstv %s713_s8  ;;  %v318_v15 = vadd.f32 %v314_v63, %v276_v42  ;;  %v319_v16 = vadd.f32 %v315_v0, %v277_v47 }
  0x69   :  { %v320_v17 = vadd.f32 %v316_v1, %v278_v48  ;;  %v323_v18 = vmul.f32 %v321_v2, %v300_v39  ;;  %v324_v19 = vmul.f32 %v321_v2, %v710_v40  ;;  %v340_v20 = vadd.f32 %v339_v10, %v308_v5 }
  0x6a   :  { %v341_v21 = vadd.f32 %v339_v10, %v309_v6  ;;  %v342_v22 = vadd.f32 %v339_v10, %v310_v7  ;;  %v325_v23 = vmul.f32 %v321_v2, %v302_v46  ;;  %v331_v24 = vmul.f32 %v330_v14, %v299_v38 }
  0x6b   :  { %v343_v25 = vadd.f32 %v339_v10, %v311_v9  ;;  %v353_v26 = vstv %s717_s10  ;;  %v326_v27 = vadd.f32 %v322_v13, %v284_v55  ;;  %v332_v28 = vmul.f32 %v330_v14, %v300_v39 }
  0x6c   :  { %484 = vtanh.f32 %v340_v20  ;;  %v354_v29 = vadd.f32 %v353_v26, %v317_v12  ;;  %v327_v30 = vadd.f32 %v323_v18, %v285_v59  ;;  %v355_v31 = vadd.f32 %v353_v26, %v318_v15 }
  0x6d   :  { %486 = vtanh.f32 %v341_v21  ;;  %v371_v32 = vstv %s719_s11  ;;  %v328_v33 = vadd.f32 %v324_v19, %v286_v60  ;;  %v333_v34 = vmul.f32 %v330_v14, %v710_v40 }
  0x6e   :  { %488 = vtanh.f32 %v342_v22  ;;  %v356_v35 = vadd.f32 %v353_v26, %v319_v16  ;;  %v329_v36 = vadd.f32 %v325_v23, %v287_v61  ;;  %v334_v37 = vmul.f32 %v330_v14, %v302_v46 }
  0x6f   :  { %490 = vtanh.f32 %v343_v25  ;;  %v357_v38 = vadd.f32 %v353_v26, %v320_v17  ;;  %v335_v41 = vadd.f32 %v331_v24, %v293_v3  ;;  %v372_v42 = vadd.f32 %v371_v32, %v326_v27 }
  0x70   :  { %492 = vtanh.f32 %v354_v29  ;;  %v336_v39 = vadd.f32 %v332_v28, %v294_v4  ;;  %v373_v43 = vadd.f32 %v371_v32, %v327_v30  ;;  %v389_v44 = vstv %s725_s12 }
  0x71   :  { %494 = vtanh.f32 %v355_v31  ;;  %v337_v45 = vadd.f32 %v333_v34, %v295_v8  ;;  %v374_v47 = vadd.f32 %v371_v32, %v328_v33  ;;  %v338_v48 = vadd.f32 %v334_v37, %v296_v11 }
  0x72   :  { %496 = vtanh.f32 %v356_v35  ;;  %v375_v40 = vadd.f32 %v371_v32, %v329_v36  ;;  %v390_v49 = vadd.f32 %v389_v44, %v335_v41  ;;  %v391_v46 = vadd.f32 %v389_v44, %v336_v39 }
  0x73   :  { %498 = vtanh.f32 %v357_v38  ;;  %v392_v50 = vadd.f32 %v389_v44, %v337_v45  ;;  %v393_v51 = vadd.f32 %v389_v44, %v338_v48  ;;  %v348_v53 = vstv %s100_s13 }
  0x74   :  { %500 = vtanh.f32 %v372_v42  ;;  %v362_v56 = vstv %s474_s14  ;;  %v380_v3 = vstv %s475_s15  ;;  %v398_v16 = vstv %s476_s16 }
  0x75   :  { %502 = vtanh.f32 %v373_v43  ;;  %v407_v29 = vstv %s744_s3  ;;  %s429_s3 = sshll.u32 %s614_s4, 4  ;;  %s430_s3 = int_to_ptr.vmem [resolvable:$true] %s429_s3 }
  0x76   :  { %504 = vtanh.f32 %v374_v47  ;;  %s580_s19 = scalar_lea.vmem %s430_s3, 512  ;;  %p585_p7 = scmp.lt.s32.totalorder %s430_s3, %s430_s3 }
  0x77   :  { %506 = vtanh.f32 %v375_v40  ;;  %p581_p6 = scmp.ne.s32.totalorder %s430_s3, %s580_s19  ;;  %p586_p8 = scmp.lt.s32.totalorder %s580_s19, %s580_s19 }
  0x78   :  { %508 = vtanh.f32 %v390_v49 }
  0x79   :  { %v485_v52 = vpop.eup %484  ;;  %510 = vtanh.f32 %v391_v46  ;;  %p587_p9 = por %p586_p8, %p585_p7 }
  0x7a   :  { %v487_v54 = vpop.eup %486  ;;  %512 = vtanh.f32 %v392_v50  ;;  %v349_v58 = vmul.f32 %v485_v52, %v348_v53 }
  0x7b   :  { %v489_v55 = vpop.eup %488  ;;  %514 = vtanh.f32 %v393_v51  ;;  %v350_v60 = vmul.f32 %v487_v54, %v348_v53  ;;  %p588_p10 = pnand %p587_p9, %p581_p6 }
  0x7c   :  { %v491_v57 = vpop.eup %490  ;;  %v351_v62 = vmul.f32 %v489_v55, %v348_v53 }
  0x7d   :  { %v493_v59 = vpop.eup %492  ;;  %v352_v1 = vmul.f32 %v491_v57, %v348_v53 }
  0x7e   :  { %v495_v61 = vpop.eup %494  ;;  %v363_v63 = vmul.f32 %v493_v59, %v362_v56 }
  0x7f   :  { %v497_v0 = vpop.eup %496  ;;  %v364_v2 = vmul.f32 %v495_v61, %v362_v56 }
  0x80   :  { %v499_v5 = vpop.eup %498  ;;  %v365_v6 = vmul.f32 %v497_v0, %v362_v56  ;;  %v367_v7 = vadd.f32 %v363_v63, %v349_v58 }
  0x81   :  { %v501_v4 = vpop.eup %500  ;;  %v366_v8 = vmul.f32 %v499_v5, %v362_v56  ;;  %v368_v9 = vadd.f32 %v364_v2, %v350_v60 }
  0x82   :  { %v503_v10 = vpop.eup %502  ;;  %v369_v11 = vadd.f32 %v365_v6, %v351_v62  ;;  %v381_v12 = vmul.f32 %v501_v4, %v380_v3 }
  0x83   :  { %v505_v13 = vpop.eup %504  ;;  %v370_v14 = vadd.f32 %v366_v8, %v352_v1  ;;  %v382_v15 = vmul.f32 %v503_v10, %v380_v3 }
  0x84   :  { %v507_v17 = vpop.eup %506  ;;  %v383_v18 = vmul.f32 %v505_v13, %v380_v3  ;;  %v385_v19 = vadd.f32 %v381_v12, %v367_v7 }
  0x85   :  { %v509_v20 = vpop.eup %508  ;;  %v384_v21 = vmul.f32 %v507_v17, %v380_v3  ;;  %v386_v22 = vadd.f32 %v382_v15, %v368_v9 }
  0x86   :  { %v511_v23 = vpop.eup %510  ;;  %v387_v24 = vadd.f32 %v383_v18, %v369_v11  ;;  %v399_v25 = vmul.f32 %v509_v20, %v398_v16 }
  0x87   :  { %v513_v26 = vpop.eup %512  ;;  %v388_v27 = vadd.f32 %v384_v21, %v370_v14  ;;  %v400_v28 = vmul.f32 %v511_v23, %v398_v16 }
  0x88   :  { %v515_v30 = vpop.eup %514  ;;  %v401_v31 = vmul.f32 %v513_v26, %v398_v16  ;;  %v403_v32 = vadd.f32 %v399_v25, %v385_v19 }
  0x89   :  { %v402_v33 = vmul.f32 %v515_v30, %v398_v16  ;;  %v404_v34 = vadd.f32 %v400_v28, %v386_v22 }
  0x8a   :  { %v405_v35 = vadd.f32 %v401_v31, %v387_v24  ;;  %v408_v36 = vadd.f32 %v407_v29, %v403_v32 }
  0x8b   :  { %v406_v37 = vadd.f32 %v402_v33, %v388_v27  ;;  %v409_v38 = vadd.f32 %v407_v29, %v404_v34 }
  0x8c   :  { %v410_v41 = vadd.f32 %v407_v29, %v405_v35  ;;  %516 = vtanh.f32 %v408_v36 }
  0x8d   :  { %v411_v42 = vadd.f32 %v407_v29, %v406_v37  ;;  %518 = vtanh.f32 %v409_v38 }
  0x8e   :  { %520 = vtanh.f32 %v410_v41 }
  0x8f   :  { %522 = vtanh.f32 %v411_v42 }
  0x99   :  { %v517_v39 = vpop.eup %516 }
  0x9a   :  { %v519_v43 = vpop.eup %518  ;;  %v416_v44 = vmul.f32 0.5, %v517_v39 }
  0x9b   :  { %v521_v45 = vpop.eup %520  ;;  %v417_v47 = vmul.f32 0.5, %v519_v43 }
  0x9c   :  { %v523_v48 = vpop.eup %522  ;;  %v418_v40 = vmul.f32 0.5, %v521_v45  ;;  %420 = vst [vmem:[#allocation11] sm:$0xff] %v416_v44 }
  0x9d   :  { %v419_v49 = vmul.f32 0.5, %v523_v48  ;;  %421 = vst [vmem:[#allocation11 + $0x8] sm:$0xff] %v417_v47 }
  0x9e   :  { %422 = vst [vmem:[#allocation11 + $0x10] sm:$0xff] %v418_v40 }
  0x9f   :  { %423 = vst [vmem:[#allocation11 + $0x18] sm:$0xff] %v419_v49 }
  0xa0   :  { %591 = shalt.err (!%p588_p10)
}
  0xa1   :  { %435 = dma.vmem_to_hbm [thread:$0]  %s430_s3, 512, %s746_s5, [#allocation5], %s612_s2, %s612_s2, %s613_s9  }
  0xa2   :  { %606 = dma.done.wait [#allocation5], 512  }
  0xa3   :  { %607 = vsyncadd [#allocation5], 4294966784 }
  0xa4   :  { %439 = vsyncpa [#allocation4], 1 }
  0xa5   :  { %440 = vsyncpa [#allocation5], 1 }
  0xa6   :  { %441 = vsyncpa [#allocation6], 1 }
  0xa7   :  { %442 = vsyncpa [#allocation8], 1 }

</bundles_post_ra>
